<compile_context>
chip_gen: v7x
topology: tpu7x:2x2x1
jax: 0.10.0
libtpu: 0.0.40
codegen_flags: <defaults>
</compile_context>

<pallas_src>
import jax
import jax.numpy as jnp
from jax.experimental import pallas as pl
from jax.experimental.pallas import tpu as pltpu


def decoder_lstm_kernel(tok_ref,      # SMEM (1,)  int32   token id (scalar prefetch)
                        x_ref,        # VMEM (1, 1, H) bf16  gathered embedding row
                        h_ref,        # VMEM (1, H) f32     previous hidden
                        c_ref,        # VMEM (1, H) f32     previous cell
                        wg_ref,       # VMEM (2H, 4H) bf16  fused [w_ih; w_hh]^T (gates i,f,g,o)
                        bg_ref,       # VMEM (1, 4H) f32    b_ih + b_hh
                        wout_ref,     # VMEM (H, Vp) bf16   output projection (padded, transposed)
                        bout_ref,     # VMEM (1, Vp) f32    output bias (padded lanes = -1e30)
                        logp_ref,     # VMEM (1, Vp) f32    log-softmax output (lane-dense)
                        h_out_ref,    # VMEM (1, H) f32     new hidden
                        c_out_ref,    # VMEM (1, H) f32     new cell
                        xh_ref):      # VMEM (1, 2H) f32    scratch for fused [x, h]
    del tok_ref  # embedding gather already done via the BlockSpec index_map
    H = h_ref.shape[-1]

    # Embedding row + ReLU (F.relu(embedding(input)))
    x = jnp.maximum(x_ref[0].astype(jnp.float32), 0.0)       # (1, H)
    h = h_ref[...]
    c = c_ref[...]

    # Fuse [x, h] -> (1, 2H) in scratch so all 4 gates are one MXU push.
    xh_ref[:, 0:H] = x
    xh_ref[:, H:2 * H] = h
    xh = xh_ref[...].astype(jnp.bfloat16)                    # (1, 2H) bf16

    gates = jnp.dot(xh, wg_ref[...],
                    preferred_element_type=jnp.float32) + bg_ref[...]   # (1, 4H) f32

    i_g = jax.nn.sigmoid(gates[:, 0 * H:1 * H])
    f_g = jax.nn.sigmoid(gates[:, 1 * H:2 * H])
    g_g = jnp.tanh(gates[:, 2 * H:3 * H])
    o_g = jax.nn.sigmoid(gates[:, 3 * H:4 * H])

    c_new = f_g * c + i_g * g_g
    h_new = o_g * jnp.tanh(c_new)

    # Linear + LogSoftmax over a lane-dense, padded vocab axis.
    logits = jnp.dot(h_new.astype(jnp.bfloat16), wout_ref[...],
                     preferred_element_type=jnp.float32) + bout_ref[...]   # (1, Vp)
    m = jnp.max(logits, axis=-1, keepdims=True)
    lse = jnp.log(jnp.sum(jnp.exp(logits - m), axis=-1, keepdims=True)) + m
    logp_ref[...] = logits - lse

    h_out_ref[...] = h_new
    c_out_ref[...] = c_new


def decoder_lstm_forward(token, hidden, prep, output_size):
    """token: int32 (1,); hidden: (h, c) each (1, 1, H); prep: prepared params."""
    emb3, wg, bg, wout, bout = prep
    H = wg.shape[0] // 2
    Vp = wout.shape[1]

    h0 = hidden[0].reshape(1, H).astype(jnp.float32)
    c0 = hidden[1].reshape(1, H).astype(jnp.float32)
    tok = token.astype(jnp.int32).reshape(1)

    grid_spec = pltpu.PrefetchScalarGridSpec(
        num_scalar_prefetch=1,
        grid=(1,),
        in_specs=[
            # gather exactly one embedding row using the prefetched token id
            pl.BlockSpec((1, 1, H), lambda i, tok: (tok[0], 0, 0)),
            pl.BlockSpec((1, H), lambda i, tok: (0, 0)),          # h
            pl.BlockSpec((1, H), lambda i, tok: (0, 0)),          # c
            pl.BlockSpec((2 * H, 4 * H), lambda i, tok: (0, 0)),  # fused gate weights
            pl.BlockSpec((1, 4 * H), lambda i, tok: (0, 0)),      # fused gate bias
            pl.BlockSpec((H, Vp), lambda i, tok: (0, 0)),         # output projection
            pl.BlockSpec((1, Vp), lambda i, tok: (0, 0)),         # output bias (padded)
        ],
        out_specs=(
            pl.BlockSpec((1, Vp), lambda i, tok: (0, 0)),
            pl.BlockSpec((1, H), lambda i, tok: (0, 0)),
            pl.BlockSpec((1, H), lambda i, tok: (0, 0)),
        ),
        scratch_shapes=[pltpu.VMEM((1, 2 * H), jnp.float32)],
    )

    logp_pad, h_new, c_new = pl.pallas_call(
        decoder_lstm_kernel,
        out_shape=(
            jax.ShapeDtypeStruct((1, Vp), jnp.float32),
            jax.ShapeDtypeStruct((1, H), jnp.float32),
            jax.ShapeDtypeStruct((1, H), jnp.float32),
        ),
        grid_spec=grid_spec,
        compiler_params=pltpu.CompilerParams(
            dimension_semantics=("arbitrary",),
            vmem_limit_bytes=64 * 1024 * 1024,
        ),
    )(tok, emb3, h0, c0, wg, bg, wout, bout)

    logp = logp_pad[:, :output_size]
    return logp, (h_new.reshape(1, 1, H), c_new.reshape(1, 1, H))


def make_params(key, hidden_size, output_size):
    """Deterministic synthetic parameters matching nn.Embedding/nn.LSTM/nn.Linear shapes."""
    H, V = hidden_size, output_size
    ks = jax.random.split(key, 7)
    bound = 1.0 / (H ** 0.5)
    emb = jax.random.normal(ks[0], (V, H), jnp.float32)                        # nn.Embedding(V, H)
    w_ih = jax.random.uniform(ks[1], (4 * H, H), jnp.float32, -bound, bound)   # lstm.weight_ih_l0
    w_hh = jax.random.uniform(ks[2], (4 * H, H), jnp.float32, -bound, bound)   # lstm.weight_hh_l0
    b_ih = jax.random.uniform(ks[3], (4 * H,), jnp.float32, -bound, bound)
    b_hh = jax.random.uniform(ks[4], (4 * H,), jnp.float32, -bound, bound)
    w_out = jax.random.uniform(ks[5], (V, H), jnp.float32, -bound, bound)      # nn.Linear(H, V)
    b_out = jax.random.uniform(ks[6], (V,), jnp.float32, -bound, bound)
    return emb, w_ih, w_hh, b_ih, b_hh, w_out, b_out


def prepare_params(raw):
    """Repack raw PyTorch-shaped params into the kernel's fused / padded bf16 layout."""
    emb, w_ih, w_hh, b_ih, b_hh, w_out, b_out = raw
    V, H = emb.shape
    Vp = ((V + 127) // 128) * 128

    emb3 = emb.astype(jnp.bfloat16).reshape(V, 1, H)                  # row-gatherable layout
    wg = jnp.concatenate([w_ih.T, w_hh.T], axis=0).astype(jnp.bfloat16)   # (2H, 4H), gates i,f,g,o
    bg = (b_ih + b_hh).reshape(1, 4 * H).astype(jnp.float32)
    wout = jnp.zeros((H, Vp), jnp.float32).at[:, :V].set(w_out.T).astype(jnp.bfloat16)
    bout = jnp.full((1, Vp), -1e30, jnp.float32).at[:, :V].set(b_out)  # padded lanes -> -inf-ish
    return emb3, wg, bg, wout, bout


def reference_forward_matched(token, hidden, prep, output_size):
    """Plain-JAX reference using the exact same bf16 weights / casts as the kernel."""
    emb3, wg, bg, wout, bout = prep
    H = wg.shape[0] // 2
    x = jnp.maximum(emb3[token[0], 0].astype(jnp.float32), 0.0)[None, :]
    h = hidden[0].reshape(1, H).astype(jnp.float32)
    c = hidden[1].reshape(1, H).astype(jnp.float32)
    xh = jnp.concatenate([x, h], axis=-1).astype(jnp.bfloat16)
    gates = jnp.dot(xh, wg, preferred_element_type=jnp.float32) + bg
    i_g = jax.nn.sigmoid(gates[:, 0 * H:1 * H])
    f_g = jax.nn.sigmoid(gates[:, 1 * H:2 * H])
    g_g = jnp.tanh(gates[:, 2 * H:3 * H])
    o_g = jax.nn.sigmoid(gates[:, 3 * H:4 * H])
    c_new = f_g * c + i_g * g_g
    h_new = o_g * jnp.tanh(c_new)
    logits = jnp.dot(h_new.astype(jnp.bfloat16), wout,
                     preferred_element_type=jnp.float32) + bout
    logp = jax.nn.log_softmax(logits[:, :output_size], axis=1)
    return logp, (h_new.reshape(1, 1, H), c_new.reshape(1, 1, H))


def reference_forward_f32(token, hidden, raw):
    """PyTorch-faithful full-f32 reference (embedding -> relu -> LSTM -> linear -> log_softmax)."""
    emb, w_ih, w_hh, b_ih, b_hh, w_out, b_out = raw
    H = emb.shape[1]
    x = jnp.maximum(emb[token[0]][None, :], 0.0)
    h = hidden[0].reshape(1, H)
    c = hidden[1].reshape(1, H)
    gates = x @ w_ih.T + h @ w_hh.T + (b_ih + b_hh)[None, :]
    i_g = jax.nn.sigmoid(gates[:, 0 * H:1 * H])
    f_g = jax.nn.sigmoid(gates[:, 1 * H:2 * H])
    g_g = jnp.tanh(gates[:, 2 * H:3 * H])
    o_g = jax.nn.sigmoid(gates[:, 3 * H:4 * H])
    c_new = f_g * c + i_g * g_g
    h_new = o_g * jnp.tanh(c_new)
    logits = h_new @ w_out.T + b_out[None, :]
    logp = jax.nn.log_softmax(logits, axis=1)
    return logp, (h_new.reshape(1, 1, H), c_new.reshape(1, 1, H))


if __name__ == "__main__":
    hidden_size = 32
    output_size = 64

    key = jax.random.PRNGKey(0)
    raw = make_params(key, hidden_size, output_size)
    prep = prepare_params(raw)

    token = jnp.array([3], dtype=jnp.int32)                  # decoder input token id
    hidden = (jnp.zeros((1, 1, hidden_size), jnp.float32),   # initHidden()
              jnp.zeros((1, 1, hidden_size), jnp.float32))

    logp, (h_new, c_new) = decoder_lstm_forward(token, hidden, prep, output_size)
    jax.block_until_ready((logp, h_new, c_new))

    logp_m, (h_m, c_m) = reference_forward_matched(token, hidden, prep, output_size)
    logp_f, (h_f, c_f) = reference_forward_f32(token, hidden, raw)

    assert logp.shape == (1, output_size)
    assert h_new.shape == (1, 1, hidden_size) and c_new.shape == (1, 1, hidden_size)

    # Tight check against a reference that uses the same bf16 weight storage.
    assert jnp.allclose(logp, logp_m, atol=2e-4)
    assert jnp.allclose(h_new, h_m, atol=2e-4)
    assert jnp.allclose(c_new, c_m, atol=2e-4)

    # Loose check against the full-f32 PyTorch-faithful math (bf16 storage error only).
    assert jnp.allclose(logp, logp_f, atol=5e-2)
    assert jnp.allclose(h_new, h_f, atol=5e-2)
    assert jnp.allclose(c_new, c_f, atol=5e-2)

    print("KERNEL_OK")
</pallas_src>

<mosaic_0001>
module attributes {stable_mosaic.version = 11 : i64} {
  func.func @decoder_lstm_kernel(%arg0: i32, %arg1: memref<1xi32, #tpu.memory_space<smem>>, %arg2: memref<1x1x32xbf16, #tpu.memory_space<vmem>>, %arg3: memref<1x32xf32, #tpu.memory_space<vmem>>, %arg4: memref<1x32xf32, #tpu.memory_space<vmem>>, %arg5: memref<64x128xbf16, #tpu.memory_space<vmem>>, %arg6: memref<1x128xf32, #tpu.memory_space<vmem>>, %arg7: memref<32x128xbf16, #tpu.memory_space<vmem>>, %arg8: memref<1x128xf32, #tpu.memory_space<vmem>>, %arg9: memref<1x128xf32, #tpu.memory_space<vmem>>, %arg10: memref<1x32xf32, #tpu.memory_space<vmem>>, %arg11: memref<1x32xf32, #tpu.memory_space<vmem>>, %arg12: memref<1x64xf32, #tpu.memory_space<vmem>>) attributes {dimension_semantics = [#tpu.dimension_semantics<arbitrary>], iteration_bounds = array<i64: 1>, scalar_prefetch = 1 : i64, scratch_operands = 1 : i64, tpu.core_type = #tpu.core_type<tc>, window_params = [{transform_indices = @transform_0, window_bounds = array<i64: 1, 1, 32>}, {pipeline_mode = #tpu.pipeline_mode<synchronous>, transform_indices = @transform_1, window_bounds = array<i64: 1, 32>}, {pipeline_mode = #tpu.pipeline_mode<synchronous>, transform_indices = @transform_2, window_bounds = array<i64: 1, 32>}, {pipeline_mode = #tpu.pipeline_mode<synchronous>, transform_indices = @transform_3, window_bounds = array<i64: 64, 128>}, {pipeline_mode = #tpu.pipeline_mode<synchronous>, transform_indices = @transform_4, window_bounds = array<i64: 1, 128>}, {pipeline_mode = #tpu.pipeline_mode<synchronous>, transform_indices = @transform_5, window_bounds = array<i64: 32, 128>}, {pipeline_mode = #tpu.pipeline_mode<synchronous>, transform_indices = @transform_6, window_bounds = array<i64: 1, 128>}, {pipeline_mode = #tpu.pipeline_mode<synchronous>, transform_indices = @transform_7, window_bounds = array<i64: 1, 128>}, {pipeline_mode = #tpu.pipeline_mode<synchronous>, transform_indices = @transform_8, window_bounds = array<i64: 1, 32>}, {pipeline_mode = #tpu.pipeline_mode<synchronous>, transform_indices = @transform_9, window_bounds = array<i64: 1, 32>}]} {
    %c0 = arith.constant 0 : index
    %c0_0 = arith.constant 0 : index
    %c0_1 = arith.constant 0 : index
    %0 = vector.load %arg2[%c0, %c0_0, %c0_1] : memref<1x1x32xbf16, #tpu.memory_space<vmem>>, vector<1x1x32xbf16>
    %1 = vector.shape_cast %0 : vector<1x1x32xbf16> to vector<1x32xbf16>
    %2 = arith.extf %1 : vector<1x32xbf16> to vector<1x32xf32>
    %cst = arith.constant 0.000000e+00 : f32
    %3 = vector.broadcast %cst : f32 to vector<1x32xf32>
    %4 = arith.maximumf %2, %3 : vector<1x32xf32>
    %c0_2 = arith.constant 0 : index
    %c0_3 = arith.constant 0 : index
    %5 = vector.load %arg3[%c0_2, %c0_3] : memref<1x32xf32, #tpu.memory_space<vmem>>, vector<1x32xf32>
    %c0_4 = arith.constant 0 : index
    %c0_5 = arith.constant 0 : index
    %6 = vector.load %arg4[%c0_4, %c0_5] : memref<1x32xf32, #tpu.memory_space<vmem>>, vector<1x32xf32>
    %c0_6 = arith.constant 0 : index
    %c0_7 = arith.constant 0 : index
    %7 = vector.load %arg12[%c0_6, %c0_7] : memref<1x64xf32, #tpu.memory_space<vmem>>, vector<1x32xf32>
    tpu.vector_store %arg12[%c0_6, %c0_7], %4 {strides = array<i32>} : memref<1x64xf32, #tpu.memory_space<vmem>>, vector<1x32xf32>,
    %c0_8 = arith.constant 0 : index
    %c32 = arith.constant 32 : index
    %8 = vector.load %arg12[%c0_8, %c32] : memref<1x64xf32, #tpu.memory_space<vmem>>, vector<1x32xf32>
    tpu.vector_store %arg12[%c0_8, %c32], %5 {strides = array<i32>} : memref<1x64xf32, #tpu.memory_space<vmem>>, vector<1x32xf32>,
    %c0_9 = arith.constant 0 : index
    %c0_10 = arith.constant 0 : index
    %9 = vector.load %arg12[%c0_9, %c0_10] : memref<1x64xf32, #tpu.memory_space<vmem>>, vector<1x64xf32>
    %10 = arith.truncf %9 : vector<1x64xf32> to vector<1x64xbf16>
    %c0_11 = arith.constant 0 : index
    %c0_12 = arith.constant 0 : index
    %11 = vector.load %arg5[%c0_11, %c0_12] : memref<64x128xbf16, #tpu.memory_space<vmem>>, vector<64x128xbf16>
    %cst_13 = arith.constant dense<0.000000e+00> : vector<1x128xf32>
    %12 = tpu.matmul %10, %11, %cst_13 {dimension_numbers = #tpu.dot_dimension_numbers<[1], [0], [0], [1], [0, 0, 1, 1], [], []>} : vector<1x64xbf16>, vector<64x128xbf16>, vector<1x128xf32> -> vector<1x128xf32>
    %c0_14 = arith.constant 0 : index
    %c0_15 = arith.constant 0 : index
    %13 = vector.load %arg6[%c0_14, %c0_15] : memref<1x128xf32, #tpu.memory_space<vmem>>, vector<1x128xf32>
    %14 = arith.addf %12, %13 : vector<1x128xf32>
    %15 = vector.extract_strided_slice %14 {offsets = [0, 0], sizes = [1, 32], strides = [1, 1]} : vector<1x128xf32> to vector<1x32xf32>
    %16 = arith.negf %15 : vector<1x32xf32>
    %17 = math.exp %16 : vector<1x32xf32>
    %cst_16 = arith.constant 1.000000e+00 : f32
    %18 = vector.broadcast %cst_16 : f32 to vector<1x32xf32>
    %19 = arith.addf %18, %17 : vector<1x32xf32>
    %20 = arith.divf %18, %19 : vector<1x32xf32>
    %21 = vector.extract_strided_slice %14 {offsets = [0, 32], sizes = [1, 32], strides = [1, 1]} : vector<1x128xf32> to vector<1x32xf32>
    %22 = arith.negf %21 : vector<1x32xf32>
    %23 = math.exp %22 : vector<1x32xf32>
    %cst_17 = arith.constant 1.000000e+00 : f32
    %24 = vector.broadcast %cst_17 : f32 to vector<1x32xf32>
    %25 = arith.addf %24, %23 : vector<1x32xf32>
    %26 = arith.divf %24, %25 : vector<1x32xf32>
    %27 = vector.extract_strided_slice %14 {offsets = [0, 64], sizes = [1, 32], strides = [1, 1]} : vector<1x128xf32> to vector<1x32xf32>
    %28 = math.tanh %27 : vector<1x32xf32>
    %29 = vector.extract_strided_slice %14 {offsets = [0, 96], sizes = [1, 32], strides = [1, 1]} : vector<1x128xf32> to vector<1x32xf32>
    %30 = arith.negf %29 : vector<1x32xf32>
    %31 = math.exp %30 : vector<1x32xf32>
    %cst_18 = arith.constant 1.000000e+00 : f32
    %32 = vector.broadcast %cst_18 : f32 to vector<1x32xf32>
    %33 = arith.addf %32, %31 : vector<1x32xf32>
    %34 = arith.divf %32, %33 : vector<1x32xf32>
    %35 = arith.mulf %26, %6 : vector<1x32xf32>
    %36 = arith.mulf %20, %28 : vector<1x32xf32>
    %37 = arith.addf %35, %36 : vector<1x32xf32>
    %38 = math.tanh %37 : vector<1x32xf32>
    %39 = arith.mulf %34, %38 : vector<1x32xf32>
    %40 = arith.truncf %39 : vector<1x32xf32> to vector<1x32xbf16>
    %c0_19 = arith.constant 0 : index
    %c0_20 = arith.constant 0 : index
    %41 = vector.load %arg7[%c0_19, %c0_20] : memref<32x128xbf16, #tpu.memory_space<vmem>>, vector<32x128xbf16>
    %cst_21 = arith.constant dense<0.000000e+00> : vector<1x128xf32>
    %42 = tpu.matmul %40, %41, %cst_21 {dimension_numbers = #tpu.dot_dimension_numbers<[1], [0], [0], [1], [0, 0, 1, 1], [], []>} : vector<1x32xbf16>, vector<32x128xbf16>, vector<1x128xf32> -> vector<1x128xf32>
    %c0_22 = arith.constant 0 : index
    %c0_23 = arith.constant 0 : index
    %43 = vector.load %arg8[%c0_22, %c0_23] : memref<1x128xf32, #tpu.memory_space<vmem>>, vector<1x128xf32>
    %44 = arith.addf %42, %43 : vector<1x128xf32>
    %cst_24 = arith.constant dense<0xFF800000> : vector<1xf32>
    %45 = vector.multi_reduction <maximumf>, %44, %cst_24 [1] : vector<1x128xf32> to vector<1xf32>
    %46 = vector.shape_cast %45 : vector<1xf32> to vector<1x1xf32>
    %47 = vector.broadcast %46 : vector<1x1xf32> to vector<1x128xf32>
    %48 = arith.subf %44, %47 : vector<1x128xf32>
    %49 = math.exp %48 : vector<1x128xf32>
    %cst_25 = arith.constant dense<0.000000e+00> : vector<1xf32>
    %50 = vector.multi_reduction <add>, %49, %cst_25 [1] : vector<1x128xf32> to vector<1xf32>
    %51 = vector.shape_cast %50 : vector<1xf32> to vector<1x1xf32>
    %52 = math.log %51 : vector<1x1xf32>
    %53 = arith.addf %52, %46 : vector<1x1xf32>
    %54 = vector.broadcast %53 : vector<1x1xf32> to vector<1x128xf32>
    %55 = arith.subf %44, %54 : vector<1x128xf32>
    %c0_26 = arith.constant 0 : index
    %c0_27 = arith.constant 0 : index
    %56 = vector.load %arg9[%c0_26, %c0_27] : memref<1x128xf32, #tpu.memory_space<vmem>>, vector<1x128xf32>
    tpu.vector_store %arg9[%c0_26, %c0_27], %55 {strides = array<i32>} : memref<1x128xf32, #tpu.memory_space<vmem>>, vector<1x128xf32>,
    %c0_28 = arith.constant 0 : index
    %c0_29 = arith.constant 0 : index
    %57 = vector.load %arg10[%c0_28, %c0_29] : memref<1x32xf32, #tpu.memory_space<vmem>>, vector<1x32xf32>
    tpu.vector_store %arg10[%c0_28, %c0_29], %39 {strides = array<i32>} : memref<1x32xf32, #tpu.memory_space<vmem>>, vector<1x32xf32>,
    %c0_30 = arith.constant 0 : index
    %c0_31 = arith.constant 0 : index
    %58 = vector.load %arg11[%c0_30, %c0_31] : memref<1x32xf32, #tpu.memory_space<vmem>>, vector<1x32xf32>
    tpu.vector_store %arg11[%c0_30, %c0_31], %37 {strides = array<i32>} : memref<1x32xf32, #tpu.memory_space<vmem>>, vector<1x32xf32>,
    return
  }
  func.func @transform_0(%arg0: i32, %arg1: memref<1xi32, #tpu.memory_space<smem>>) -> (i32, i32, i32) {
    %c0 = arith.constant 0 : index
    %0 = memref.load %arg1[%c0] : memref<1xi32, #tpu.memory_space<smem>>
    %c0_i32 = arith.constant 0 : i32
    %c0_i32_0 = arith.constant 0 : i32
    %c0_i32_1 = arith.constant 0 : i32
    return %0, %c0_i32, %c0_i32_0 : i32, i32, i32
  }
  func.func @transform_1(%arg0: i32, %arg1: memref<1xi32, #tpu.memory_space<smem>>) -> (i32, i32) {
    %c0_i32 = arith.constant 0 : i32
    %c0_i32_0 = arith.constant 0 : i32
    %c0_i32_1 = arith.constant 0 : i32
    return %c0_i32, %c0_i32_0 : i32, i32
  }
  func.func @transform_2(%arg0: i32, %arg1: memref<1xi32, #tpu.memory_space<smem>>) -> (i32, i32) {
    %c0_i32 = arith.constant 0 : i32
    %c0_i32_0 = arith.constant 0 : i32
    %c0_i32_1 = arith.constant 0 : i32
    return %c0_i32, %c0_i32_0 : i32, i32
  }
  func.func @transform_3(%arg0: i32, %arg1: memref<1xi32, #tpu.memory_space<smem>>) -> (i32, i32) {
    %c0_i32 = arith.constant 0 : i32
    %c0_i32_0 = arith.constant 0 : i32
    %c0_i32_1 = arith.constant 0 : i32
    return %c0_i32, %c0_i32_0 : i32, i32
  }
  func.func @transform_4(%arg0: i32, %arg1: memref<1xi32, #tpu.memory_space<smem>>) -> (i32, i32) {
    %c0_i32 = arith.constant 0 : i32
    %c0_i32_0 = arith.constant 0 : i32
    %c0_i32_1 = arith.constant 0 : i32
    return %c0_i32, %c0_i32_0 : i32, i32
  }
  func.func @transform_5(%arg0: i32, %arg1: memref<1xi32, #tpu.memory_space<smem>>) -> (i32, i32) {
    %c0_i32 = arith.constant 0 : i32
    %c0_i32_0 = arith.constant 0 : i32
    %c0_i32_1 = arith.constant 0 : i32
    return %c0_i32, %c0_i32_0 : i32, i32
  }
  func.func @transform_6(%arg0: i32, %arg1: memref<1xi32, #tpu.memory_space<smem>>) -> (i32, i32) {
    %c0_i32 = arith.constant 0 : i32
    %c0_i32_0 = arith.constant 0 : i32
    %c0_i32_1 = arith.constant 0 : i32
    return %c0_i32, %c0_i32_0 : i32, i32
  }
  func.func @transform_7(%arg0: i32, %arg1: memref<1xi32, #tpu.memory_space<smem>>) -> (i32, i32) {
    %c0_i32 = arith.constant 0 : i32
    %c0_i32_0 = arith.constant 0 : i32
    %c0_i32_1 = arith.constant 0 : i32
    return %c0_i32, %c0_i32_0 : i32, i32
  }
  func.func @transform_8(%arg0: i32, %arg1: memref<1xi32, #tpu.memory_space<smem>>) -> (i32, i32) {
    %c0_i32 = arith.constant 0 : i32
    %c0_i32_0 = arith.constant 0 : i32
    %c0_i32_1 = arith.constant 0 : i32
    return %c0_i32, %c0_i32_0 : i32, i32
  }
  func.func @transform_9(%arg0: i32, %arg1: memref<1xi32, #tpu.memory_space<smem>>) -> (i32, i32) {
    %c0_i32 = arith.constant 0 : i32
    %c0_i32_0 = arith.constant 0 : i32
    %c0_i32_1 = arith.constant 0 : i32
    return %c0_i32, %c0_i32_0 : i32, i32
  }
}

</mosaic_0001>

<bundles_post_ra>
// kernel: tpu_custom_call.1
= control target key start
LH: loop header
LB: loop body
LE: loop exit
PB: predicated region body
PF: predicated region fallthrough
CT: control target
= control target key end

     0   :  { %17 = vsyncpa [#allocation6], 0  ;;  %s920_s0 = inlined_call_operand.<no memory space> [shape: s32[1], index: 0, kind: input, shape index: {}]   ;;  %s921_s1 = inlined_call_operand.hbm [shape: bf16[64,1,32], index: 1, kind: input, shape index: {}]   ;;  %s922_s2 = inlined_call_operand.hbm [shape: f32[1,32], index: 2, kind: input, shape index: {}]   ;;  %s923_s3 = inlined_call_operand.hbm [shape: f32[1,32], index: 3, kind: input, shape index: {}]   ;;  %s924_s4 = inlined_call_operand.hbm [shape: bf16[64,128], index: 4, kind: input, shape index: {}]   ;;  %s925_s5 = inlined_call_operand.hbm [shape: f32[1,128], index: 5, kind: input, shape index: {}]   ;;  %s926_s6 = inlined_call_operand.hbm [shape: bf16[32,128], index: 6, kind: input, shape index: {}]   ;;  %s927_s7 = inlined_call_operand.hbm [shape: f32[1,128], index: 7, kind: input, shape index: {}]   ;;  %s928_s8 = inlined_call_operand.hbm [shape: f32[1,128], index: 8, kind: output, shape index: {0}]   ;;  %s929_s9 = inlined_call_operand.hbm [shape: f32[1,32], index: 9, kind: output, shape index: {1}]   ;;  %s930_s10 = inlined_call_operand.hbm [shape: f32[1,32], index: 10, kind: output, shape index: {2}]  }
   0x1   :  { %18 = vsyncpa [#allocation9], 0 }
   0x2   :  { %19 = vsyncpa [#allocation12], 0 }
   0x3   :  { %20 = vsyncpa [#allocation15], 0 }
   0x4   :  { %21 = vsyncpa [#allocation7], 0 }
   0x5   :  { %22 = vsyncpa [#allocation19], 0  ;;  %s696_s13 = smov [#allocation8]   ;;  %s697_s15 = smov [#allocation11]  }
   0x6   :  { %s42_s14 = sshll.u32 %s696_s13, 4  ;;  %s61_s16 = sshll.u32 %s697_s15, 4  ;;  %s43_s14 = int_to_ptr.vmem [resolvable:$true] %s42_s14  ;;  %s767_s16 = int_to_ptr.vmem [resolvable:$true] %s61_s16 }
   0x7   :  { %s462_s19 = scalar_lea.hbm %s922_s2, 16 }
   0x8   :  { %p463_p0 = scmp.ne.s32.totalorder %s922_s2, %s462_s19  ;;  %p466_p1 = scmp.lt.u32.totalorder %s462_s19, %s922_s2 }
   0xa   :  { %p468_p2 = pnand %p466_p1, %p463_p0 }
   0xc   :  { %471 = shalt.err (!%p468_p2)
}
   0xd   :  { %s472_s24 = scalar_lea.vmem %s43_s14, 16  ;;  %s476_s25 = scalar_lea.vmem %s43_s14, 32 }
   0xe   :  { %p473_p3 = scmp.ne.s32.totalorder %s43_s14, %s472_s24  ;;  %p477_p4 = scmp.lt.s32.totalorder %s43_s14, %s43_s14 }
   0xf   :  { %p478_p5 = scmp.lt.s32.totalorder %s476_s25, %s472_s24 }
  0x11   :  { %p479_p6 = por %p478_p5, %p477_p4 }
  0x13   :  { %p480_p7 = pnand %p479_p6, %p473_p3 }
  0x15   :  { %483 = shalt.err (!%p480_p7)
}
  0x16   :  { %45 = dma.hbm_to_vmem [thread:$0]  %s922_s2, 16, %s43_s14, [#allocation9]  }
  0x17   :  { %s484_s30 = scalar_lea.hbm %s924_s4, 512 }
  0x18   :  { %p485_p8 = scmp.ne.s32.totalorder %s924_s4, %s484_s30  ;;  %p488_p9 = scmp.lt.u32.totalorder %s484_s30, %s924_s4 }
  0x1a   :  { %p490_p10 = pnand %p488_p9, %p485_p8 }
  0x1c   :  { %493 = shalt.err (!%p490_p10)
}
  0x1d   :  { %s494_s17 = scalar_lea.vmem %s767_s16, 512  ;;  %p499_p12 = scmp.lt.s32.totalorder %s767_s16, %s767_s16 }
  0x1e   :  { %p495_p11 = scmp.ne.s32.totalorder %s767_s16, %s494_s17  ;;  %p500_p13 = scmp.lt.s32.totalorder %s494_s17, %s494_s17 }
  0x20   :  { %p501_p0 = por %p500_p13, %p499_p12 }
  0x22   :  { %p502_p1 = pnand %p501_p0, %p495_p11 }
  0x24   :  { %505 = shalt.err (!%p502_p1)
}
  0x25   :  { %s698_s2 = smov 64   ;;  %s699_s14 = smov 4  }
  0x26   :  { %67 = dma.hbm_to_vmem [thread:$0]  %s924_s4, 512, %s767_s16, [#allocation12], %s698_s2, %s698_s2, %s699_s14  }
  0x27   :  { %s388_s22 = sshll.u32 %s920_s0, 4  ;;  %s700_s23 = smov [#allocation14]  }
  0x28   :  { %s83_s24 = sshll.u32 %s700_s23, 4  ;;  %s806_s27 = scalar_lea.hbm %s921_s1, %s388_s22  ;;  %s84_s24 = int_to_ptr.vmem [resolvable:$true] %s83_s24 }
  0x29   :  { %s506_s30 = scalar_lea.hbm %s926_s6, 256 }
  0x2a   :  { %p507_p2 = scmp.ne.s32.totalorder %s926_s6, %s506_s30  ;;  %p510_p3 = scmp.lt.u32.totalorder %s506_s30, %s926_s6 }
  0x2c   :  { %p512_p4 = pnand %p510_p3, %p507_p2 }
  0x2e   :  { %515 = shalt.err (!%p512_p4)
}
  0x2f   :  { %s516_s0 = scalar_lea.vmem %s84_s24, 256  ;;  %p521_p6 = scmp.lt.s32.totalorder %s84_s24, %s84_s24 }
  0x30   :  { %p517_p5 = scmp.ne.s32.totalorder %s84_s24, %s516_s0  ;;  %p522_p7 = scmp.lt.s32.totalorder %s516_s0, %s516_s0 }
  0x32   :  { %p523_p8 = por %p522_p7, %p521_p6 }
  0x34   :  { %p524_p9 = pnand %p523_p8, %p517_p5 }
  0x36   :  { %527 = shalt.err (!%p524_p9)
}
  0x37   :  { %89 = dma.hbm_to_vmem [thread:$0]  %s926_s6, 256, %s84_s24, [#allocation15], %s698_s2, %s698_s2, %s699_s14  }
  0x38   :  { %s701_s17 = smov [#allocation5]   ;;  %s702_s19 = smov [#allocation10]  }
  0x39   :  { %s32_s18 = sshll.u32 %s701_s17, 4  ;;  %s52_s20 = sshll.u32 %s702_s19, 4  ;;  %s33_s18 = int_to_ptr.vmem [resolvable:$true] %s32_s18  ;;  %s53_s20 = int_to_ptr.vmem [resolvable:$true] %s52_s20 }
  0x3a   :  { %s528_s21 = scalar_lea.hbm %s806_s27, 16  ;;  %s530_s25 = scalar_lea.hbm %s921_s1, 1024 }
  0x3b   :  { %p529_p10 = scmp.ne.s32.totalorder %s806_s27, %s528_s21  ;;  %p531_p11 = scmp.lt.u32.totalorder %s806_s27, %s921_s1 }
  0x3c   :  { %p532_p12 = scmp.lt.u32.totalorder %s530_s25, %s528_s21  ;;  %p534_p0 = scmp.lt.u32.totalorder %s528_s21, %s806_s27 }
  0x3e   :  { %p533_p13 = por %p532_p12, %p531_p11 }
  0x40   :  { %p535_p1 = por %p534_p0, %p533_p13 }
  0x42   :  { %p536_p2 = pnand %p535_p1, %p529_p10 }
  0x44   :  { %539 = shalt.err (!%p536_p2)
}
  0x45   :  { %s540_s6 = scalar_lea.vmem %s33_s18, 16  ;;  %s544_s14 = scalar_lea.vmem %s33_s18, 32 }
  0x46   :  { %p541_p3 = scmp.ne.s32.totalorder %s33_s18, %s540_s6  ;;  %p545_p4 = scmp.lt.s32.totalorder %s33_s18, %s33_s18 }
  0x47   :  { %p546_p5 = scmp.lt.s32.totalorder %s544_s14, %s540_s6 }
  0x49   :  { %p547_p6 = por %p546_p5, %p545_p4 }
  0x4b   :  { %p548_p7 = pnand %p547_p6, %p541_p3 }
  0x4d   :  { %551 = shalt.err (!%p548_p7)
}
  0x4e   :  { %35 = dma.hbm_to_vmem [thread:$0]  %s806_s27, 16, %s33_s18, [#allocation6]  }
  0x4f   :  { %s552_s1 = scalar_lea.hbm %s923_s3, 16 }
  0x50   :  { %p553_p8 = scmp.ne.s32.totalorder %s923_s3, %s552_s1  ;;  %p556_p9 = scmp.lt.u32.totalorder %s552_s1, %s923_s3 }
  0x52   :  { %p558_p10 = pnand %p556_p9, %p553_p8 }
  0x54   :  { %561 = shalt.err (!%p558_p10)
}
  0x55   :  { %s562_s16 = scalar_lea.vmem %s53_s20, 16  ;;  %s566_s0 = scalar_lea.vmem %s53_s20, 32 }
  0x56   :  { %p563_p11 = scmp.ne.s32.totalorder %s53_s20, %s562_s16  ;;  %p567_p12 = scmp.lt.s32.totalorder %s53_s20, %s53_s20 }
  0x57   :  { %p568_p13 = scmp.lt.s32.totalorder %s566_s0, %s562_s16 }
  0x59   :  { %p569_p0 = por %p568_p13, %p567_p12 }
  0x5b   :  { %p570_p1 = pnand %p569_p0, %p563_p11 }
  0x5d   :  { %573 = shalt.err (!%p570_p1)
}
  0x5e   :  { %55 = dma.hbm_to_vmem [thread:$0]  %s923_s3, 16, %s53_s20, [#allocation9]  }
  0x5f   :  { %s703_s15 = smov [#allocation13]   ;;  %s704_s18 = smov [#allocation16]  }
  0x60   :  { %s74_s17 = sshll.u32 %s703_s15, 4  ;;  %s96_s19 = sshll.u32 %s704_s18, 4  ;;  %s75_s17 = int_to_ptr.vmem [resolvable:$true] %s74_s17  ;;  %s97_s19 = int_to_ptr.vmem [resolvable:$true] %s96_s19 }
  0x61   :  { %s574_s23 = scalar_lea.hbm %s925_s5, 16 }
  0x62   :  { %p575_p2 = scmp.ne.s32.totalorder %s925_s5, %s574_s23  ;;  %p578_p3 = scmp.lt.u32.totalorder %s574_s23, %s925_s5 }
  0x64   :  { %p580_p4 = pnand %p578_p3, %p575_p2 }
  0x66   :  { %583 = shalt.err (!%p580_p4)
}
  0x67   :  { %s584_s3 = scalar_lea.vmem %s75_s17, 16  ;;  %s588_s20 = scalar_lea.vmem %s75_s17, 32 }
  0x68   :  { %p585_p5 = scmp.ne.s32.totalorder %s75_s17, %s584_s3  ;;  %p589_p6 = scmp.lt.s32.totalorder %s75_s17, %s75_s17 }
  0x69   :  { %p590_p7 = scmp.lt.s32.totalorder %s588_s20, %s584_s3 }
  0x6b   :  { %p591_p8 = por %p590_p7, %p589_p6 }
  0x6d   :  { %p592_p9 = pnand %p591_p8, %p585_p5 }
  0x6f   :  { %595 = shalt.err (!%p592_p9)
}
  0x70   :  { %77 = dma.hbm_to_vmem [thread:$0]  %s925_s5, 16, %s75_s17, [#allocation12]  }
  0x71   :  { %s596_s30 = scalar_lea.hbm %s927_s7, 16 }
  0x72   :  { %p597_p10 = scmp.ne.s32.totalorder %s927_s7, %s596_s30  ;;  %p600_p11 = scmp.lt.u32.totalorder %s596_s30, %s927_s7 }
  0x74   :  { %p602_p12 = pnand %p600_p11, %p597_p10 }
  0x76   :  { %605 = shalt.err (!%p602_p12)
}
  0x77   :  { %s606_s0 = scalar_lea.vmem %s97_s19, 16  ;;  %s610_s27 = scalar_lea.vmem %s97_s19, 32 }
  0x78   :  { %p607_p13 = scmp.ne.s32.totalorder %s97_s19, %s606_s0  ;;  %p611_p0 = scmp.lt.s32.totalorder %s97_s19, %s97_s19 }
  0x79   :  { %p612_p1 = scmp.lt.s32.totalorder %s610_s27, %s606_s0 }
  0x7b   :  { %p613_p2 = por %p612_p1, %p611_p0 }
  0x7d   :  { %p614_p3 = pnand %p613_p2, %p607_p13 }
  0x7f   :  { %617 = shalt.err (!%p614_p3)
}
  0x80   :  { %99 = dma.hbm_to_vmem [thread:$0]  %s927_s7, 16, %s97_s19, [#allocation15]  }
  0x81   :  { %684 = dma.done.wait [#allocation6], 16  }
  0x82   :  { %685 = vsyncadd [#allocation6], 4294967280 }
  0x83   :  { %686 = dma.done.wait [#allocation9], 32  }
  0x84   :  { %687 = vsyncadd [#allocation9], 4294967264 }
  0x85   :  { %688 = dma.done.wait [#allocation12], 528  }
  0x86   :  { %689 = vsyncadd [#allocation12], 4294966768 }
  0x87   :  { %690 = dma.done.wait [#allocation15], 272  }
  0x88   :  { %691 = vsyncadd [#allocation15], 4294967024  ;;  %v705_v0 = vmov 0.0   ;;  %vm706_vm0 = vmmov 0   ;;  %v389_v1 = vld [vmem:[#allocation8] ss:$0 sm:$0xff] }
  0x89   :  { %408 = vmatprep.subr.bf16.mxu0 %v705_v0  ;;  %420 = vmatprep.subr.bf16.mxu1 %v705_v0  ;;  %s707_s15 = smov 32   ;;  %v444_v2 = vld [vmem:[#allocation11] sm:$0xff]   ;;  %v123_v3 = vld [vmem:[#allocation5] sm:$0x1]  ;;  %v445_v4 = vld [vmem:[#allocation11 + $0x8] sm:$0xff]   ;;  %vm128_vm1 = vcmask 253952  }
  0x8a   :  { %416 = vmatprep.mubr.msk.bf16.mxu0 %vm706_vm0, %v705_v0  ;;  %424 = vmatprep.mubr.msk.bf16.mxu1 %vm706_vm0, %v705_v0  ;;  %v124_v5 = vunpack.c.l.bf16 %v123_v3  ;;  %v396_v6 = vld [vmem:[#allocation10] ss:$0 sm:$0xff]  ;;  %v446_v8 = vld [vmem:[#allocation11 + $0x10] sm:$0xff]   ;;  %vm138_vm2 = vcmask 516352   ;;  %vm175_vm3 = vcmask 523264   ;;  %v448_v30 = vld [vmem:[#allocation14] sm:$0xff]  }
  0x8b   :  { %135 = vrot.lane.b32.xlu0 %v389_v1, %s707_s15  ;;  %409 = vmatpush3.bf16.msra.mxu0 %v444_v2  ;;  %v447_v9 = vld [vmem:[#allocation11 + $0x18] sm:$0xff]   ;;  %v150_v13 = vld [vmem:[#allocation13] sm:$0x1]  ;;  %v449_v31 = vld [vmem:[#allocation14 + $0x8] sm:$0xff]   ;;  %vm272_vm4 = vcmask 261120   ;;  %vm316_vm5 = vcmask 1040384  }
  0x8c   :  { %410 = vmatprep.subr.bf16.mxu0 %v705_v0  ;;  %v125_v7 = vmax.f32 %v124_v5, 0.0  ;;  %231 = vrot.lane.b32.xlu1 %v396_v6, %s707_s15  ;;  %v256_v37 = vld [vmem:[#allocation16] sm:$0x1]  ;;  %s708_s7 = smov 96  }
  0x8d   :  { %421 = vmatpush3.bf16.msra.mxu1 %v448_v30 }
  0x8e   :  { %129 = vst.msk [vmem:[#allocation2] sm:$0x1] %vm128_vm1, %v125_v7  ;;  %422 = vmatprep.subr.bf16.mxu1 %v705_v0 }
  0x8f   :  { %411 = vmatpush3.bf16.msra.mxu0 %v445_v4 }
  0x90   :  { %412 = vmatprep.subr.bf16.mxu0 %v705_v0 }
  0x91   :  { %423 = vmatpush3.bf16.msra.mxu1 %v449_v31 }
  0x93   :  { %413 = vmatpush3.bf16.msra.mxu0 %v446_v8 }
  0x94   :  { %414 = vmatprep.subr.bf16.mxu0 %v705_v0 }
  0x97   :  { %415 = vmatpush3.bf16.msra.mxu0 %v447_v9 }
  0xfd   :  { %v136_v10 = vpop.permute.xlu0 %135 }
  0xfe   :  { %139 = vst.msk [vmem:[#allocation2] sm:$0x1] %vm138_vm2, %v136_v10  ;;  %v232_v26 = vpop.permute.xlu1 %231 }
 0x105   :  { %v140_v11 = vld [vmem:[#allocation2] sm:$0x1] }
 0x106   :  { %v141_v12 = vpack.c.bf16 %v140_v11, %v140_v11 }
 0x108   :  { %417 = vmatmul.mubr.msk.bf16.vlgmr.msra.gmra.mrb[0].mxu0 %vm175_vm3, %v141_v12 }
 0x1db   :  { %v213_v14 = vpop.f32.mrb[0].mxu0 }
 0x1dc   :  { %v214_v15 = vadd.f32 %v213_v14, %v150_v13  ;;  %v418_v16 = vpop.f32.mrb[1].mxu0 }
 0x1dd   :  { %v216_v17 = vpop.f32.mrb[2].mxu0 }
 0x1de   :  { %450 = vtanh.f32 %v214_v15  ;;  %v419_v18 = vpop.f32.mrb[3].mxu0  ;;  %v395_v20 = vmul.f32 -1.442695, %v214_v15 }
 0x1e0   :  { %452 = vpow2.f32 %v395_v20 }
 0x1e8   :  { %v451_v19 = vpop.eup %450 }
 0x1e9   :  { %236 = vrot.lane.b32.xlu0 %v451_v19, %s698_s2 }
 0x1ea   :  { %v453_v21 = vpop.eup %452 }
 0x1eb   :  { %v222_v22 = vadd.f32 1.0, %v453_v21 }
 0x1ed   :  { %454 = vrcp.f32 %v222_v22 }
 0x1f7   :  { %v455_v23 = vpop.eup %454 }
 0x1f8   :  { %v234_v27 = vmul.f32 %v455_v23, %v232_v26 }
 0x25b   :  { %v237_v24 = vpop.permute.xlu0 %236 }
 0x25c   :  { %v239_v25 = vmul.f32 %v455_v23, %v237_v24 }
 0x25e   :  { %241 = vrot.lane.b32.xlu1 %v239_v25, %s707_s15 }
 0x2d0   :  { %v242_v28 = vpop.permute.xlu1 %241 }
 0x2d1   :  { %v244_v29 = vadd.f32 %v242_v28, %v234_v27 }
 0x2d3   :  { %456 = vtanh.f32 %v244_v29 }
 0x2dd   :  { %v457_v32 = vpop.eup %456 }
 0x2de   :  { %247 = vrot.lane.b32.xlu0 %v457_v32, %s698_s2  ;;  %s709_s2 = smov [#allocation18]  }
 0x2df   :  { %s357_s17 = sshll.u32 %s709_s2, 4  ;;  %s358_s17 = int_to_ptr.vmem [resolvable:$true] %s357_s17 }
 0x2e0   :  { %s618_s18 = scalar_lea.vmem %s358_s17, 16  ;;  %s622_s19 = scalar_lea.vmem %s358_s17, 32 }
 0x2e1   :  { %p619_p4 = scmp.ne.s32.totalorder %s358_s17, %s618_s18  ;;  %p623_p5 = scmp.lt.s32.totalorder %s358_s17, %s358_s17 }
 0x2e2   :  { %p624_p6 = scmp.lt.s32.totalorder %s622_s19, %s618_s18 }
 0x2e4   :  { %p625_p7 = por %p624_p6, %p623_p5 }
 0x2e6   :  { %p626_p8 = pnand %p625_p7, %p619_p4 }
 0x350   :  { %v248_v33 = vpop.permute.xlu0 %247 }
 0x351   :  { %v250_v34 = vmul.f32 %v455_v23, %v248_v33 }
 0x353   :  { %v251_v35 = vpack.c.bf16 %v250_v34, %v250_v34 }
 0x355   :  { %258 = vrot.lane.b32.xlu1 %v251_v35, %s707_s15 }
 0x3c7   :  { %v259_v36 = vpop.permute.xlu1 %258 }
 0x3c8   :  { %425 = vmatmul.mubr.msk.bf16.vlgmr.msra.gmra.mrb[0].mxu1 %vm272_vm4, %v259_v36 }
 0x49b   :  { %v310_v38 = vpop.f32.mrb[0].mxu1 }
 0x49c   :  { %v876_v39 = vadd.f32 %v310_v38, %v256_v37  ;;  %v426_v40 = vpop.f32.mrb[1].mxu1 }
 0x49d   :  { %v313_v41 = vpop.f32.mrb[2].mxu1 }
 0x49e   :  { %v427_v42 = vpop.f32.mrb[3].mxu1  ;;  %v317_v43 = vsel %vm316_vm5, %v876_v39, -inf }
 0x49f   :  { %318 = vmax.xlane.f32.xlu0 %v317_v43 }
 0x4b5   :  { %332 = vrot.lane.b32.xlu0 %v250_v34, %s707_s15 }
 0x52c   :  { %v319_v44 = vpop.xlane.xlu0 %318 }
 0x52d   :  { %v320_v45 = vsub.f32 %v876_v39, %v319_v44 }
 0x52f   :  { %v321_v46 = vmul.f32 1.442695, %v320_v45 }
 0x530   :  { %v333_v47 = vpop.permute.xlu0 %332 }
 0x531   :  { %458 = vpow2.f32 %v321_v46  ;;  %335 = vst.msk [vmem:[#allocation18] sm:$0x1] %vm128_vm1, %v333_v47 }
 0x53b   :  { %v459_v48 = vpop.eup %458 }
 0x53c   :  { %v323_v49 = vsel %vm316_vm5, %v459_v48, 0.0 }
 0x53d   :  { %324 = vadd.xlane.f32.xlu1 %v323_v49 }
 0x54e   :  { %337 = vrot.lane.b32.xlu1 %v244_v29, %s708_s7 }
 0x54f   :  { %629 = shalt.err (!%p626_p8)
}
 0x550   :  { %s630_s23 = scalar_lea.hbm %s929_s9, 16 }
 0x551   :  { %p631_p9 = scmp.ne.s32.totalorder %s929_s9, %s630_s23  ;;  %p634_p10 = scmp.lt.u32.totalorder %s630_s23, %s929_s9 }
 0x553   :  { %p636_p11 = pnand %p634_p10, %p631_p9 }
 0x555   :  { %639 = shalt.err (!%p636_p11)
}
 0x556   :  { %360 = dma.vmem_to_hbm [thread:$0]  %s358_s17, 16, %s929_s9, [#allocation19]  }
 0x557   :  { %s710_s14 = smov [#allocation20]  }
 0x558   :  { %s367_s24 = sshll.u32 %s710_s14, 4  ;;  %s368_s24 = int_to_ptr.vmem [resolvable:$true] %s367_s24 }
 0x559   :  { %s640_s29 = scalar_lea.vmem %s368_s24, 16  ;;  %s644_s1 = scalar_lea.vmem %s368_s24, 32 }
 0x55a   :  { %p641_p12 = scmp.ne.s32.totalorder %s368_s24, %s640_s29  ;;  %p645_p13 = scmp.lt.s32.totalorder %s368_s24, %s368_s24 }
 0x55b   :  { %p646_p0 = scmp.lt.s32.totalorder %s644_s1, %s640_s29 }
 0x55d   :  { %p647_p1 = por %p646_p0, %p645_p13 }
 0x55f   :  { %p648_p2 = pnand %p647_p1, %p641_p12 }
 0x5ca   :  { %v325_v50 = vpop.xlane.xlu1 %324 }
 0x5cb   :  { %460 = vlog2.f32 %v325_v50 }
 0x5ce   :  { %v338_v51 = vpop.permute.xlu1 %337 }
 0x5cf   :  { %340 = vst.msk [vmem:[#allocation20] sm:$0x1] %vm128_vm1, %v338_v51 }
 0x5d0   :  { %651 = shalt.err (!%p648_p2)
}
 0x5d1   :  { %s652_s9 = scalar_lea.hbm %s930_s10, 16 }
 0x5d2   :  { %p653_p3 = scmp.ne.s32.totalorder %s930_s10, %s652_s9  ;;  %p656_p4 = scmp.lt.u32.totalorder %s652_s9, %s930_s10 }
 0x5d4   :  { %p658_p5 = pnand %p656_p4, %p653_p3 }
 0x5d6   :  { %661 = shalt.err (!%p658_p5)
}
 0x5d7   :  { %370 = dma.vmem_to_hbm [thread:$0]  %s368_s24, 16, %s930_s10, [#allocation19]   ;;  %v461_v52 = vpop.eup %460 }
 0x5d8   :  { %v327_v53 = vmul.f32 0.6931472, %v461_v52  ;;  %s711_s13 = smov [#allocation17]  }
 0x5d9   :  { %s347_s15 = sshll.u32 %s711_s13, 4  ;;  %s348_s15 = int_to_ptr.vmem [resolvable:$true] %s347_s15 }
 0x5da   :  { %v328_v54 = vadd.f32 %v327_v53, %v319_v44  ;;  %s662_s7 = scalar_lea.vmem %s348_s15, 16  ;;  %s666_s2 = scalar_lea.vmem %s348_s15, 32 }
 0x5db   :  { %p663_p6 = scmp.ne.s32.totalorder %s348_s15, %s662_s7  ;;  %p667_p7 = scmp.lt.s32.totalorder %s348_s15, %s348_s15 }
 0x5dc   :  { %v329_v55 = vsub.f32 %v876_v39, %v328_v54  ;;  %p668_p8 = scmp.lt.s32.totalorder %s666_s2, %s662_s7 }
 0x5de   :  { %330 = vst [vmem:[#allocation17] sm:$0x1] %v329_v55  ;;  %p669_p9 = por %p668_p8, %p667_p7 }
 0x5e0   :  { %p670_p10 = pnand %p669_p9, %p663_p6 }
 0x5e2   :  { %673 = shalt.err (!%p670_p10)
}
 0x5e3   :  { %s674_s10 = scalar_lea.hbm %s928_s8, 16 }
 0x5e4   :  { %p675_p11 = scmp.ne.s32.totalorder %s928_s8, %s674_s10  ;;  %p678_p12 = scmp.lt.u32.totalorder %s674_s10, %s928_s8 }
 0x5e6   :  { %p680_p13 = pnand %p678_p12, %p675_p11 }
 0x5e8   :  { %683 = shalt.err (!%p680_p13)
}
 0x5e9   :  { %350 = dma.vmem_to_hbm [thread:$0]  %s348_s15, 16, %s928_s8, [#allocation7]  }
 0x5ea   :  { %692 = dma.done.wait [#allocation7], 16  }
 0x5eb   :  { %693 = vsyncadd [#allocation7], 4294967280 }
 0x5ec   :  { %694 = dma.done.wait [#allocation19], 32  }
 0x5ed   :  { %695 = vsyncadd [#allocation19], 4294967264 }
 0x5ee   :  { %380 = vsyncpa [#allocation6], 1 }
 0x5ef   :  { %381 = vsyncpa [#allocation9], 1 }
 0x5f0   :  { %382 = vsyncpa [#allocation12], 1 }
 0x5f1   :  { %383 = vsyncpa [#allocation15], 1 }
 0x5f2   :  { %384 = vsyncpa [#allocation7], 1 }
 0x5f3   :  { %385 = vsyncpa [#allocation19], 1 }

</bundles_post_ra>
